<compile_context>
chip_gen: v7x
topology: tpu7x:2x2x1
jax: 0.10.0
libtpu: 0.0.40
codegen_flags: <defaults>
</compile_context>

<pallas_src>
import jax
import jax.numpy as jnp
from jax.experimental import pallas as pl
from jax.experimental.pallas import tpu as pltpu


def _cdiv(a, b):
    return -(-a // b)


def _round_up(x, m):
    return ((x + m - 1) // m) * m


def _num_parallel_tcs():
    """Best-effort count of TensorCores a 'parallel' grid axis can shard across."""
    try:
        kind = jax.devices()[0].device_kind.lower()
    except Exception:
        return 1
    if any(tag in kind for tag in ("v4", "v5p", "v7", "7x")):
        return 2
    return 1


def _select_batch_tiling(batch, max_batch_tile, num_tcs):
    """Balanced batch tiling.

    Prefers a single grid step (per TensorCore).  Returns (tile_rows, num_blocks);
    when num_blocks == 1 the tile equals the full batch (no (8, .) divisibility
    requirement and no padding).
    """
    nb = max(1, _cdiv(batch, max_batch_tile))
    if num_tcs > 1 and batch >= 8 * num_tcs:
        nb = _round_up(nb, num_tcs)          # one (or more) blocks per TensorCore
    if nb == 1:
        return batch, 1                      # full-array block, zero padding
    tb = _round_up(_cdiv(batch, nb), 8)      # balanced blocks, 8-row aligned
    nb = _cdiv(batch, tb)
    return tb, nb


def _actor_kernel(limit_ref, x_ref, w1_ref, b1_ref, w2_ref, b2_ref,
                  w3_ref, b3_ref, out_ref):
    """One batch tile of the 3-layer MLP + tanh + action_limit scale."""
    # Cast activations to bf16 only at the MXU boundary; accumulate in f32 and
    # keep all elementwise work (bias add / ReLU / tanh / scale) in f32.
    x = x_ref[...].astype(jnp.bfloat16)                               # (TB, S)

    h1 = jnp.dot(x, w1_ref[...], preferred_element_type=jnp.float32)
    h1 = jnp.maximum(h1 + b1_ref[...], 0.0)                           # (TB, H1)

    h2 = jnp.dot(h1.astype(jnp.bfloat16), w2_ref[...],
                 preferred_element_type=jnp.float32)
    h2 = jnp.maximum(h2 + b2_ref[...], 0.0)                           # (TB, H2)

    o = jnp.dot(h2.astype(jnp.bfloat16), w3_ref[...],
                preferred_element_type=jnp.float32)
    o = jnp.tanh(o + b3_ref[...])                                     # (TB, A_pad)

    out_ref[...] = (limit_ref[0] * o).astype(out_ref.dtype)


def deterministic_actor_forward(state, params, action_limit=1.0,
                                max_batch_tile=2048):
    """Pallas implementation of DeterministicActor.forward.

    Args:
      state:  (batch, state_dim) float32 or bfloat16.
      params: dict with w1 (S,H1) bf16, b1 (1,H1) f32, w2 (H1,H2) bf16,
              b2 (1,H2) f32, w3 (H2,A) bf16, b3 (1,A) f32.
      action_limit: scale of the tanh output (runtime SMEM scalar, no recompile).
      max_batch_tile: rows per grid step cap (2048 keeps per-step live VMEM
              well under every generation's scoped limit at vmem_limit=32 MiB).

    Returns:
      (action, hc) with action (batch, action_dim) in state.dtype and hc=None
      (the feedforward approximator carries no hidden state).
    """
    w1, b1 = params["w1"], params["b1"]
    w2, b2 = params["w2"], params["b2"]
    w3, b3 = params["w3"], params["b3"]

    batch, state_dim = state.shape
    h1 = w1.shape[1]
    h2 = w2.shape[1]
    action_dim = w3.shape[1]

    # Lane-dense output head: pad layer-3 to a multiple of 128 output lanes so
    # the epilogue + stores run unmasked.  These pads are on tiny tensors
    # (256x8 -> 256x128); in production they would be folded into param init or
    # hidden by jitting the wrapper.  Zero bias columns -> tanh(0)=0 junk lanes.
    out_lanes = _round_up(action_dim, 128)
    if out_lanes != action_dim:
        w3p = jnp.pad(w3, ((0, 0), (0, out_lanes - action_dim)))
        b3p = jnp.pad(b3, ((0, 0), (0, out_lanes - action_dim)))
    else:
        w3p, b3p = w3, b3

    tb, nb = _select_batch_tiling(batch, max_batch_tile, _num_parallel_tcs())
    padded_batch = tb * nb
    state_in = state
    if padded_batch != batch:
        # Zero padding keeps the extra rows finite (relu/tanh of the biases);
        # they are sliced off below.
        state_in = jnp.pad(state, ((0, padded_batch - batch), (0, 0)))

    limit = jnp.asarray([action_limit], dtype=jnp.float32)

    # Constant-block-index operands: VMEM-resident across grid steps and
    # single-buffered (pl.Buffered(1)) -- no pointless double-buffer bookkeeping.
    def const(shape):
        return pl.BlockSpec(shape, lambda i: (0,) * len(shape),
                            pipeline_mode=pl.Buffered(1))

    out = pl.pallas_call(
        _actor_kernel,
        out_shape=jax.ShapeDtypeStruct((padded_batch, out_lanes), state.dtype),
        grid=(nb,),
        in_specs=[
            pl.BlockSpec(memory_space=pltpu.MemorySpace.SMEM),   # action_limit
            pl.BlockSpec((tb, state_dim), lambda i: (i, 0)),     # state tile
            const((state_dim, h1)),                              # w1 (bf16)
            const((1, h1)),                                      # b1 (f32)
            const((h1, h2)),                                     # w2 (bf16)
            const((1, h2)),                                      # b2 (f32)
            const((h2, out_lanes)),                              # w3 (bf16, lane-padded)
            const((1, out_lanes)),                               # b3 (f32, lane-padded)
        ],
        out_specs=pl.BlockSpec((tb, out_lanes), lambda i: (i, 0)),
        compiler_params=pltpu.CompilerParams(
            dimension_semantics=("parallel",),       # shards batch blocks on 2-TC chips
            vmem_limit_bytes=32 * 1024 * 1024),      # safe on v5e/v6e/v7x
    )(limit, state_in, w1, b1, w2, b2, w3p, b3p)

    if padded_batch != batch or out_lanes != action_dim:
        out = out[:batch, :action_dim]
    return out, None  # hc is None for the feedforward approximator


def init_params(key, state_dim, action_dim, hidden_sizes=(256, 256)):
    """Init mimicking torch.nn.Linear default (uniform +-1/sqrt(fan_in)).

    Weights are stored transposed relative to torch ((in, out)) and in bfloat16
    as an intentional quantization of the f32 reference model (halves the
    one-shot weight DMA).  Biases stay f32.
    """
    sizes = (state_dim,) + tuple(hidden_sizes) + (action_dim,)
    params = {}
    keys = jax.random.split(key, 2 * (len(sizes) - 1))
    for i in range(len(sizes) - 1):
        fan_in, fan_out = sizes[i], sizes[i + 1]
        bound = 1.0 / (fan_in ** 0.5)
        wk, bk = keys[2 * i], keys[2 * i + 1]
        w = jax.random.uniform(wk, (fan_in, fan_out), jnp.float32,
                               minval=-bound, maxval=bound)
        b = jax.random.uniform(bk, (1, fan_out), jnp.float32,
                               minval=-bound, maxval=bound)
        params[f"w{i + 1}"] = w.astype(jnp.bfloat16)
        params[f"b{i + 1}"] = b
    return params


def reference_forward(state, params, action_limit=1.0):
    """Pure-JAX reference mirroring the kernel's bf16-at-MXU / f32-elementwise math."""
    x = state.astype(jnp.bfloat16)
    h = jnp.maximum(jnp.dot(x, params["w1"],
                            preferred_element_type=jnp.float32) + params["b1"], 0.0)
    h = jnp.maximum(jnp.dot(h.astype(jnp.bfloat16), params["w2"],
                            preferred_element_type=jnp.float32) + params["b2"], 0.0)
    pi = jnp.tanh(jnp.dot(h.astype(jnp.bfloat16), params["w3"],
                          preferred_element_type=jnp.float32) + params["b3"])
    return (action_limit * pi).astype(state.dtype)


if __name__ == "__main__":
    key = jax.random.PRNGKey(0)
    k_state, k_state_small, k_params = jax.random.split(key, 3)

    state_dim = 32
    action_dim = 8
    action_limit = 2.0   # non-trivial scale exercised through the SMEM scalar
    params = init_params(k_params, state_dim, action_dim, hidden_sizes=(256, 256))

    # Batched path: grid=(1,) on single-TC chips, (2,) on 2-TC chips.
    batch = 64
    state = jax.random.normal(k_state, (batch, state_dim), jnp.float32)
    action, hc = deterministic_actor_forward(state, params, action_limit)
    action = jax.block_until_ready(action)
    ref = reference_forward(state, params, action_limit)
    assert action.shape == (batch, action_dim)
    assert hc is None
    assert jnp.allclose(action, ref, atol=5e-4, rtol=2e-3)

    # Small / ragged batch path: single full-array block, no padding at all.
    small_batch = 3
    state_small = jax.random.normal(k_state_small, (small_batch, state_dim),
                                    jnp.float32)
    action_small, hc_small = deterministic_actor_forward(state_small, params,
                                                         action_limit)
    action_small = jax.block_until_ready(action_small)
    ref_small = reference_forward(state_small, params, action_limit)
    assert action_small.shape == (small_batch, action_dim)
    assert hc_small is None
    assert jnp.allclose(action_small, ref_small, atol=5e-4, rtol=2e-3)

    print("KERNEL_OK")
</pallas_src>

<mosaic_0001>
module attributes {stable_mosaic.version = 11 : i64} {
  func.func @_actor_kernel(%arg0: i32, %arg1: memref<1xf32, #tpu.memory_space<smem>>, %arg2: memref<64x32xf32, #tpu.memory_space<vmem>>, %arg3: memref<32x256xbf16, #tpu.memory_space<vmem>>, %arg4: memref<1x256xf32, #tpu.memory_space<vmem>>, %arg5: memref<256x256xbf16, #tpu.memory_space<vmem>>, %arg6: memref<1x256xf32, #tpu.memory_space<vmem>>, %arg7: memref<256x128xbf16, #tpu.memory_space<vmem>>, %arg8: memref<1x128xf32, #tpu.memory_space<vmem>>, %arg9: memref<64x128xf32, #tpu.memory_space<vmem>>) attributes {dimension_semantics = [#tpu.dimension_semantics<parallel>], iteration_bounds = array<i64: 1>, scalar_prefetch = 0 : i64, scratch_operands = 0 : i64, tpu.core_type = #tpu.core_type<tc>, window_params = [{transform_indices = @transform_0, window_bounds = array<i64: 1>}, {transform_indices = @transform_1, window_bounds = array<i64: 64, 32>}, {pipeline_mode = #tpu.pipeline_mode<synchronous>, transform_indices = @transform_2, window_bounds = array<i64: 32, 256>}, {pipeline_mode = #tpu.pipeline_mode<synchronous>, transform_indices = @transform_3, window_bounds = array<i64: 1, 256>}, {pipeline_mode = #tpu.pipeline_mode<synchronous>, transform_indices = @transform_4, window_bounds = array<i64: 256, 256>}, {pipeline_mode = #tpu.pipeline_mode<synchronous>, transform_indices = @transform_5, window_bounds = array<i64: 1, 256>}, {pipeline_mode = #tpu.pipeline_mode<synchronous>, transform_indices = @transform_6, window_bounds = array<i64: 256, 128>}, {pipeline_mode = #tpu.pipeline_mode<synchronous>, transform_indices = @transform_7, window_bounds = array<i64: 1, 128>}, {transform_indices = @transform_8, window_bounds = array<i64: 64, 128>}]} {
    %c0 = arith.constant 0 : index
    %c0_0 = arith.constant 0 : index
    %0 = vector.load %arg2[%c0, %c0_0] : memref<64x32xf32, #tpu.memory_space<vmem>>, vector<64x32xf32>
    %1 = arith.truncf %0 : vector<64x32xf32> to vector<64x32xbf16>
    %c0_1 = arith.constant 0 : index
    %c0_2 = arith.constant 0 : index
    %2 = vector.load %arg3[%c0_1, %c0_2] : memref<32x256xbf16, #tpu.memory_space<vmem>>, vector<32x256xbf16>
    %cst = arith.constant dense<0.000000e+00> : vector<64x256xf32>
    %3 = tpu.matmul %1, %2, %cst {dimension_numbers = #tpu.dot_dimension_numbers<[1], [0], [0], [1], [0, 0, 1, 1], [], []>} : vector<64x32xbf16>, vector<32x256xbf16>, vector<64x256xf32> -> vector<64x256xf32>
    %c0_3 = arith.constant 0 : index
    %c0_4 = arith.constant 0 : index
    %4 = vector.load %arg4[%c0_3, %c0_4] : memref<1x256xf32, #tpu.memory_space<vmem>>, vector<1x256xf32>
    %5 = vector.broadcast %4 : vector<1x256xf32> to vector<64x256xf32>
    %6 = arith.addf %3, %5 : vector<64x256xf32>
    %cst_5 = arith.constant 0.000000e+00 : f32
    %7 = vector.broadcast %cst_5 : f32 to vector<64x256xf32>
    %8 = arith.maximumf %6, %7 : vector<64x256xf32>
    %9 = arith.truncf %8 : vector<64x256xf32> to vector<64x256xbf16>
    %c0_6 = arith.constant 0 : index
    %c0_7 = arith.constant 0 : index
    %10 = vector.load %arg5[%c0_6, %c0_7] : memref<256x256xbf16, #tpu.memory_space<vmem>>, vector<256x256xbf16>
    %cst_8 = arith.constant dense<0.000000e+00> : vector<64x256xf32>
    %11 = tpu.matmul %9, %10, %cst_8 {dimension_numbers = #tpu.dot_dimension_numbers<[1], [0], [0], [1], [0, 0, 1, 1], [], []>} : vector<64x256xbf16>, vector<256x256xbf16>, vector<64x256xf32> -> vector<64x256xf32>
    %c0_9 = arith.constant 0 : index
    %c0_10 = arith.constant 0 : index
    %12 = vector.load %arg6[%c0_9, %c0_10] : memref<1x256xf32, #tpu.memory_space<vmem>>, vector<1x256xf32>
    %13 = vector.broadcast %12 : vector<1x256xf32> to vector<64x256xf32>
    %14 = arith.addf %11, %13 : vector<64x256xf32>
    %cst_11 = arith.constant 0.000000e+00 : f32
    %15 = vector.broadcast %cst_11 : f32 to vector<64x256xf32>
    %16 = arith.maximumf %14, %15 : vector<64x256xf32>
    %17 = arith.truncf %16 : vector<64x256xf32> to vector<64x256xbf16>
    %c0_12 = arith.constant 0 : index
    %c0_13 = arith.constant 0 : index
    %18 = vector.load %arg7[%c0_12, %c0_13] : memref<256x128xbf16, #tpu.memory_space<vmem>>, vector<256x128xbf16>
    %cst_14 = arith.constant dense<0.000000e+00> : vector<64x128xf32>
    %19 = tpu.matmul %17, %18, %cst_14 {dimension_numbers = #tpu.dot_dimension_numbers<[1], [0], [0], [1], [0, 0, 1, 1], [], []>} : vector<64x256xbf16>, vector<256x128xbf16>, vector<64x128xf32> -> vector<64x128xf32>
    %c0_15 = arith.constant 0 : index
    %c0_16 = arith.constant 0 : index
    %20 = vector.load %arg8[%c0_15, %c0_16] : memref<1x128xf32, #tpu.memory_space<vmem>>, vector<1x128xf32>
    %21 = vector.broadcast %20 : vector<1x128xf32> to vector<64x128xf32>
    %22 = arith.addf %19, %21 : vector<64x128xf32>
    %23 = math.tanh %22 : vector<64x128xf32>
    %c0_17 = arith.constant 0 : index
    %24 = memref.load %arg1[%c0_17] : memref<1xf32, #tpu.memory_space<smem>>
    %25 = vector.broadcast %24 : f32 to vector<64x128xf32>
    %26 = arith.mulf %25, %23 : vector<64x128xf32>
    %c0_18 = arith.constant 0 : index
    %c0_19 = arith.constant 0 : index
    %27 = vector.load %arg9[%c0_18, %c0_19] : memref<64x128xf32, #tpu.memory_space<vmem>>, vector<64x128xf32>
    tpu.vector_store %arg9[%c0_18, %c0_19], %26 {strides = array<i32>} : memref<64x128xf32, #tpu.memory_space<vmem>>, vector<64x128xf32>,
    return
  }
  func.func @transform_0(%arg0: i32) -> i32 {
    %c0_i32 = arith.constant 0 : i32
    %c0_i32_0 = arith.constant 0 : i32
    return %c0_i32 : i32
  }
  func.func @transform_1(%arg0: i32) -> (i32, i32) {
    %c0_i32 = arith.constant 0 : i32
    %c0_i32_0 = arith.constant 0 : i32
    return %arg0, %c0_i32 : i32, i32
  }
  func.func @transform_2(%arg0: i32) -> (i32, i32) {
    %c0_i32 = arith.constant 0 : i32
    %c0_i32_0 = arith.constant 0 : i32
    %c0_i32_1 = arith.constant 0 : i32
    return %c0_i32, %c0_i32_0 : i32, i32
  }
  func.func @transform_3(%arg0: i32) -> (i32, i32) {
    %c0_i32 = arith.constant 0 : i32
    %c0_i32_0 = arith.constant 0 : i32
    %c0_i32_1 = arith.constant 0 : i32
    return %c0_i32, %c0_i32_0 : i32, i32
  }
  func.func @transform_4(%arg0: i32) -> (i32, i32) {
    %c0_i32 = arith.constant 0 : i32
    %c0_i32_0 = arith.constant 0 : i32
    %c0_i32_1 = arith.constant 0 : i32
    return %c0_i32, %c0_i32_0 : i32, i32
  }
  func.func @transform_5(%arg0: i32) -> (i32, i32) {
    %c0_i32 = arith.constant 0 : i32
    %c0_i32_0 = arith.constant 0 : i32
    %c0_i32_1 = arith.constant 0 : i32
    return %c0_i32, %c0_i32_0 : i32, i32
  }
  func.func @transform_6(%arg0: i32) -> (i32, i32) {
    %c0_i32 = arith.constant 0 : i32
    %c0_i32_0 = arith.constant 0 : i32
    %c0_i32_1 = arith.constant 0 : i32
    return %c0_i32, %c0_i32_0 : i32, i32
  }
  func.func @transform_7(%arg0: i32) -> (i32, i32) {
    %c0_i32 = arith.constant 0 : i32
    %c0_i32_0 = arith.constant 0 : i32
    %c0_i32_1 = arith.constant 0 : i32
    return %c0_i32, %c0_i32_0 : i32, i32
  }
  func.func @transform_8(%arg0: i32) -> (i32, i32) {
    %c0_i32 = arith.constant 0 : i32
    %c0_i32_0 = arith.constant 0 : i32
    return %arg0, %c0_i32 : i32, i32
  }
}

</mosaic_0001>

<bundles_post_ra>
// kernel: tpu_custom_call.1
= control target key start
LH: loop header
LB: loop body
LE: loop exit
PB: predicated region body
PF: predicated region fallthrough
CT: control target
= control target key end

     0   :  { %14 = vsyncpa [#allocation4], 0  ;;  %s1185_s0 = inlined_call_operand.<no memory space> [shape: f32[1], index: 0, kind: input, shape index: {}]   ;;  %s1186_s1 = inlined_call_operand.vmem [shape: f32[64,32], index: 1, kind: input, shape index: {}]   ;;  %s1187_s2 = inlined_call_operand.vmem [shape: bf16[32,256], index: 2, kind: input, shape index: {}]   ;;  %s1188_s3 = inlined_call_operand.vmem [shape: f32[1,256], index: 3, kind: input, shape index: {}]   ;;  %s1189_s4 = inlined_call_operand.hbm [shape: bf16[256,256], index: 4, kind: input, shape index: {}]   ;;  %s1190_s5 = inlined_call_operand.vmem [shape: f32[1,256], index: 5, kind: input, shape index: {}]   ;;  %s1191_s6 = inlined_call_operand.hbm [shape: bf16[256,128], index: 6, kind: input, shape index: {}]   ;;  %s1192_s7 = inlined_call_operand.vmem [shape: f32[1,128], index: 7, kind: input, shape index: {}]   ;;  %s1193_s8 = inlined_call_operand.hbm [shape: f32[64,128], index: 8, kind: output, shape index: {}]  }
   0x1   :  { %15 = vsyncpa [#allocation7], 0 }
   0x2   :  { %16 = vsyncpa [#allocation5], 0  ;;  %s1026_s27 = smov [#allocation3]   ;;  %s954_s9 = scalar_lea.hbm %s1189_s4, 4096 }
   0x3   :  { %s30_s28 = sshll.u32 %s1026_s27, 4  ;;  %p955_p0 = scmp.ne.s32.totalorder %s1189_s4, %s954_s9  ;;  %s31_s28 = int_to_ptr.vmem [resolvable:$true] %s30_s28 }
   0x4   :  { %p958_p1 = scmp.lt.u32.totalorder %s954_s9, %s1189_s4 }
   0x6   :  { %p960_p2 = pnand %p958_p1, %p955_p0 }
   0x8   :  { %963 = shalt.err (!%p960_p2)
}
   0x9   :  { %s964_s14 = scalar_lea.vmem %s31_s28, 4096  ;;  %p969_p4 = scmp.lt.s32.totalorder %s31_s28, %s31_s28 }
   0xa   :  { %p965_p3 = scmp.ne.s32.totalorder %s31_s28, %s964_s14  ;;  %p970_p5 = scmp.lt.s32.totalorder %s964_s14, %s964_s14 }
   0xc   :  { %p971_p6 = por %p970_p5, %p969_p4 }
   0xe   :  { %p972_p7 = pnand %p971_p6, %p965_p3 }
  0x10   :  { %975 = shalt.err (!%p972_p7)
}
  0x11   :  { %s1027_s15 = smov 128   ;;  %s1028_s16 = smov 8  }
  0x12   :  { %36 = dma.hbm_to_vmem [thread:$0]  %s1189_s4, 4096, %s31_s28, [#allocation4], %s1027_s15, %s1027_s15, %s1028_s16  }
  0x13   :  { %s1029_s19 = smov [#allocation6]   ;;  %s976_s23 = scalar_lea.hbm %s1191_s6, 2048 }
  0x14   :  { %s44_s20 = sshll.u32 %s1029_s19, 4  ;;  %p977_p8 = scmp.ne.s32.totalorder %s1191_s6, %s976_s23  ;;  %s45_s20 = int_to_ptr.vmem [resolvable:$true] %s44_s20 }
  0x15   :  { %p980_p9 = scmp.lt.u32.totalorder %s976_s23, %s1191_s6 }
  0x17   :  { %p982_p10 = pnand %p980_p9, %p977_p8 }
  0x19   :  { %985 = shalt.err (!%p982_p10)
}
  0x1a   :  { %s986_s29 = scalar_lea.vmem %s45_s20, 2048  ;;  %p991_p12 = scmp.lt.s32.totalorder %s45_s20, %s45_s20 }
  0x1b   :  { %p987_p11 = scmp.ne.s32.totalorder %s45_s20, %s986_s29  ;;  %p992_p13 = scmp.lt.s32.totalorder %s986_s29, %s986_s29 }
  0x1d   :  { %p993_p0 = por %p992_p13, %p991_p12 }
  0x1f   :  { %p994_p1 = pnand %p993_p0, %p987_p11 }
  0x21   :  { %997 = shalt.err (!%p994_p1)
}
  0x22   :  { %s1030_s4 = smov 64   ;;  %s1031_s28 = smov 4  }
  0x23   :  { %50 = dma.hbm_to_vmem [thread:$0]  %s1191_s6, 2048, %s45_s20, [#allocation7], %s1030_s4, %s1030_s4, %s1031_s28  }
  0x24   :  { %1020 = dma.done.wait [#allocation4], 4096  }
  0x25   :  { %1021 = vsyncadd [#allocation4], 4294963200 }
  0x26   :  { %1022 = dma.done.wait [#allocation7], 2048  }
  0x27   :  { %1023 = vsyncadd [#allocation7], 4294965248  ;;  %v1032_v0 = vmov 0   ;;  %v868_v1 = vld [vmem:[%s1187_s2 + $0x4] ss:$8 sps:$4 sm:$0xff]   ;;  %vm108_vm0 = vcmask 261120   ;;  %v78_v61 = vlaneseq }
  0x28   :  { %153 = vmatprep.mubr.bf16.mxu0 %v1032_v0  ;;  %v870_v2 = vld [vmem:[%s1187_s2] ss:$8 sps:$4 sm:$0xff]   ;;  %121 = vmatprep.subr.bf16.mxu0 %v868_v1  ;;  %v871_v3 = vld [vmem:[%s1187_s2 + $0x14] ss:$8 sps:$4 sm:$0xff]   ;;  %v873_v4 = vld [vmem:[%s1187_s2 + $0x10] ss:$8 sps:$4 sm:$0xff]  }
  0x29   :  { %122 = vmatpush1.bf16.msra.mxu0 %v870_v2  ;;  %v60_v5 = vld [vmem:[%s1186_s1] sm:$0xff]  ;;  %v61_v6 = vld [vmem:[%s1186_s1 + $0x8] sm:$0xff]  ;;  %v877_v10 = vld [vmem:[#allocation3 + $0x14] ss:$8 sps:$4 sm:$0xff]   ;;  %v1146_v62 = vshrl.u32 %v78_v61, 7 }
  0x2a   :  { %123 = vmatprep.subr.bf16.mxu0 %v871_v3  ;;  %v68_v7 = vpack.c.bf16 %v61_v6, %v60_v5  ;;  %v874_v8 = vld [vmem:[#allocation3 + $0x4] ss:$8 sps:$4 sm:$0xff]   ;;  %v876_v9 = vld [vmem:[#allocation3] ss:$8 sps:$4 sm:$0xff]   ;;  %v879_v11 = vld [vmem:[#allocation3 + $0x10] ss:$8 sps:$4 sm:$0xff]  }
  0x2b   :  { %422 = vmatprep.subr.bf16.mxu1 %v874_v8  ;;  %v880_v12 = vld [vmem:[#allocation3 + $0x24] ss:$8 sps:$4 sm:$0xff]   ;;  %v62_v13 = vld [vmem:[%s1186_s1 + $0x10] sm:$0xff]  ;;  %v63_v14 = vld [vmem:[%s1186_s1 + $0x18] sm:$0xff]  ;;  %v80_v63 = vsub.s32 0, %v1146_v62  ;;  %v84_v1 = vsub.s32 1, %v1146_v62 }
  0x2c   :  { %423 = vmatpush1.bf16.msra.mxu1 %v876_v9  ;;  %v882_v15 = vld [vmem:[#allocation3 + $0x20] ss:$8 sps:$4 sm:$0xff]   ;;  %v69_v16 = vpack.c.bf16 %v63_v14, %v62_v13  ;;  %v883_v17 = vld [vmem:[#allocation3 + $0x34] ss:$8 sps:$4 sm:$0xff]   ;;  %v885_v18 = vld [vmem:[#allocation3 + $0x30] ss:$8 sps:$4 sm:$0xff]  }
  0x2d   :  { %124 = vmatpush1.bf16.msra.mxu0 %v873_v4  ;;  %424 = vmatprep.subr.bf16.mxu1 %v877_v10  ;;  %v886_v19 = vld [vmem:[#allocation3 + $0x44] ss:$8 sps:$4 sm:$0xff]   ;;  %v888_v22 = vld [vmem:[#allocation3 + $0x40] ss:$8 sps:$4 sm:$0xff]   ;;  %v889_v24 = vld [vmem:[#allocation3 + $0x54] ss:$8 sps:$4 sm:$0xff]  }
  0x2e   :  { %v64_v20 = vld [vmem:[%s1186_s1 + $0x20] sm:$0xff]  ;;  %v65_v21 = vld [vmem:[%s1186_s1 + $0x28] sm:$0xff]  ;;  %v891_v25 = vld [vmem:[#allocation3 + $0x50] ss:$8 sps:$4 sm:$0xff]  }
  0x2f   :  { %v70_v23 = vpack.c.bf16 %v65_v21, %v64_v20  ;;  %v892_v26 = vld [vmem:[#allocation3 + $0x64] ss:$8 sps:$4 sm:$0xff]   ;;  %v66_v27 = vld [vmem:[%s1186_s1 + $0x30] sm:$0xff]  ;;  %v67_v28 = vld [vmem:[%s1186_s1 + $0x38] sm:$0xff] }
  0x30   :  { %767 = vmatmul.mubr.msk.bf16.vlgmr.msra.gmra.mrb[0].mxu0 %vm108_vm0, %v68_v7  ;;  %425 = vmatpush1.bf16.msra.mxu1 %v879_v11  ;;  %v894_v29 = vld [vmem:[#allocation3 + $0x60] ss:$8 sps:$4 sm:$0xff]   ;;  %v895_v30 = vld [vmem:[#allocation3 + $0x74] ss:$8 sps:$4 sm:$0xff]   ;;  %v71_v31 = vpack.c.bf16 %v67_v28, %v66_v27  ;;  %v897_v32 = vld [vmem:[#allocation3 + $0x70] ss:$8 sps:$4 sm:$0xff]  }
  0x31   :  { %163 = vmatprep.mubr.bf16.mxu0 %v1032_v0  ;;  %426 = vmatprep.subr.bf16.mxu1 %v880_v12  ;;  %v898_v33 = vld [vmem:[#allocation3 + $0x84] ss:$8 sps:$4 sm:$0xff]   ;;  %v900_v34 = vld [vmem:[#allocation3 + $0x80] ss:$8 sps:$4 sm:$0xff]   ;;  %v901_v35 = vld [vmem:[#allocation3 + $0x94] ss:$8 sps:$4 sm:$0xff]  }
  0x32   :  { %v903_v36 = vld [vmem:[#allocation3 + $0x90] ss:$8 sps:$4 sm:$0xff]   ;;  %v904_v37 = vld [vmem:[#allocation3 + $0xa4] ss:$8 sps:$4 sm:$0xff]   ;;  %v906_v38 = vld [vmem:[#allocation3 + $0xa0] ss:$8 sps:$4 sm:$0xff]  }
  0x33   :  { %v907_v39 = vld [vmem:[#allocation3 + $0xb4] ss:$8 sps:$4 sm:$0xff]   ;;  %v909_v40 = vld [vmem:[#allocation3 + $0xb0] ss:$8 sps:$4 sm:$0xff]   ;;  %v910_v41 = vld [vmem:[#allocation3 + $0xc4] ss:$8 sps:$4 sm:$0xff]  }
  0x34   :  { %427 = vmatpush1.bf16.msra.mxu1 %v882_v15  ;;  %v912_v42 = vld [vmem:[#allocation3 + $0xc0] ss:$8 sps:$4 sm:$0xff]   ;;  %v913_v43 = vld [vmem:[#allocation3 + $0xd4] ss:$8 sps:$4 sm:$0xff]   ;;  %v915_v44 = vld [vmem:[#allocation3 + $0xd0] ss:$8 sps:$4 sm:$0xff]  }
  0x35   :  { %428 = vmatprep.subr.bf16.mxu1 %v883_v17  ;;  %v916_v45 = vld [vmem:[#allocation3 + $0xe4] ss:$8 sps:$4 sm:$0xff]   ;;  %v918_v46 = vld [vmem:[#allocation3 + $0xe0] ss:$8 sps:$4 sm:$0xff]   ;;  %v919_v47 = vld [vmem:[#allocation3 + $0xf4] ss:$8 sps:$4 sm:$0xff]  }
  0x36   :  { %v921_v48 = vld [vmem:[#allocation3 + $0xf0] ss:$8 sps:$4 sm:$0xff]   ;;  %v922_v49 = vld [vmem:[#allocation6 + $0x40] sm:$0xff]   ;;  %v924_v51 = vld [vmem:[#allocation6 + $0x48] sm:$0xff]  }
  0x37   :  { %v923_v50 = vld [vmem:[#allocation6] sm:$0xff]   ;;  %820 = vmatprep.subr.bf16.mxu0 %v922_v49  ;;  %v925_v52 = vld [vmem:[#allocation6 + $0x8] sm:$0xff]   ;;  %v926_v53 = vld [vmem:[#allocation6 + $0x50] sm:$0xff]  }
  0x38   :  { %768 = vmatmul.mubr.msk.bf16.gmra.mrb[4].mxu0 %vm108_vm0, %v69_v16  ;;  %429 = vmatpush1.bf16.msra.mxu1 %v885_v18  ;;  %v927_v54 = vld [vmem:[#allocation6 + $0x10] sm:$0xff]   ;;  %v928_v55 = vld [vmem:[#allocation6 + $0x58] sm:$0xff]   ;;  %v930_v57 = vld [vmem:[#allocation6 + $0x60] sm:$0xff]  }
  0x39   :  { %173 = vmatprep.mubr.bf16.mxu0 %v1032_v0  ;;  %430 = vmatprep.subr.bf16.mxu1 %v886_v19  ;;  %v929_v56 = vld [vmem:[#allocation6 + $0x18] sm:$0xff]   ;;  %v931_v58 = vld [vmem:[#allocation6 + $0x20] sm:$0xff]   ;;  %v932_v59 = vld [vmem:[#allocation6 + $0x68] sm:$0xff]  }
  0x3a   :  { %821 = vmatpush3.bf16.msra.mxu0 %v923_v50  ;;  %v933_v60 = vld [vmem:[#allocation6 + $0x28] sm:$0xff]   ;;  %v935_v61 = vld [vmem:[#allocation6 + $0x30] sm:$0xff]  }
  0x3b   :  { %822 = vmatprep.subr.bf16.mxu0 %v924_v51 }
  0x3c   :  { %431 = vmatpush1.bf16.msra.mxu1 %v888_v22 }
  0x3d   :  { %432 = vmatprep.subr.bf16.mxu1 %v889_v24 }
  0x3e   :  { %823 = vmatpush3.bf16.msra.mxu0 %v925_v52 }
  0x3f   :  { %824 = vmatprep.subr.bf16.mxu0 %v926_v53 }
  0x40   :  { %769 = vmatmul.mubr.msk.bf16.gmra.mrb[8].mxu0 %vm108_vm0, %v70_v23  ;;  %433 = vmatpush1.bf16.msra.mxu1 %v891_v25 }
  0x41   :  { %183 = vmatprep.mubr.bf16.mxu0 %v1032_v0  ;;  %434 = vmatprep.subr.bf16.mxu1 %v892_v26  ;;  %v76_v0 = vld [vmem:[%s1188_s3] sm:$0x3] }
  0x42   :  { %825 = vmatpush3.bf16.msra.mxu0 %v927_v54  ;;  %v81_v2 = vrot.slane %v76_v0, %v80_v63  ;;  %v85_v3 = vrot.slane %v76_v0, %v84_v1  ;;  %v936_v0 = vld [vmem:[#allocation6 + $0x78] sm:$0xff]  }
  0x43   :  { %826 = vmatprep.subr.bf16.mxu0 %v928_v55 }
  0x44   :  { %435 = vmatpush1.bf16.msra.mxu1 %v894_v29 }
  0x45   :  { %436 = vmatprep.subr.bf16.mxu1 %v895_v30 }
  0x46   :  { %827 = vmatpush3.bf16.msra.mxu0 %v929_v56 }
  0x47   :  { %828 = vmatprep.subr.bf16.mxu0 %v930_v57 }
  0x48   :  { %770 = vmatmul.mubr.msk.bf16.gmra.mrb[12].mxu0 %vm108_vm0, %v71_v31  ;;  %437 = vmatpush1.bf16.msra.mxu1 %v897_v32 }
  0x49   :  { %438 = vmatprep.subr.bf16.mxu1 %v898_v33 }
  0x4a   :  { %829 = vmatpush3.bf16.msra.mxu0 %v931_v58 }
  0x4b   :  { %830 = vmatprep.subr.bf16.mxu0 %v932_v59 }
  0x4c   :  { %439 = vmatpush1.bf16.msra.mxu1 %v900_v34 }
  0x4d   :  { %440 = vmatprep.subr.bf16.mxu1 %v901_v35 }
  0x4e   :  { %831 = vmatpush3.bf16.msra.mxu0 %v933_v60  ;;  %v934_v60 = vld [vmem:[#allocation6 + $0x70] sm:$0xff]  }
  0x4f   :  { %832 = vmatprep.subr.bf16.mxu0 %v934_v60  ;;  %v803_v60 = vld [vmem:[%s1192_s7] ss:$0 sm:$0xff] }
  0x50   :  { %441 = vmatpush1.bf16.msra.mxu1 %v903_v36 }
  0x51   :  { %442 = vmatprep.subr.bf16.mxu1 %v904_v37 }
  0x52   :  { %833 = vmatpush3.bf16.msra.mxu0 %v935_v61 }
  0x53   :  { %834 = vmatprep.subr.bf16.mxu0 %v936_v0 }
  0x54   :  { %443 = vmatpush1.bf16.msra.mxu1 %v906_v38 }
  0x55   :  { %444 = vmatprep.subr.bf16.mxu1 %v907_v39 }
  0x58   :  { %445 = vmatpush1.bf16.msra.mxu1 %v909_v40 }
  0x59   :  { %446 = vmatprep.subr.bf16.mxu1 %v910_v41 }
  0x5c   :  { %447 = vmatpush1.bf16.msra.mxu1 %v912_v42 }
  0x5d   :  { %448 = vmatprep.subr.bf16.mxu1 %v913_v43 }
  0x60   :  { %449 = vmatpush1.bf16.msra.mxu1 %v915_v44 }
  0x61   :  { %450 = vmatprep.subr.bf16.mxu1 %v916_v45 }
  0x64   :  { %451 = vmatpush1.bf16.msra.mxu1 %v918_v46 }
  0x65   :  { %452 = vmatprep.subr.bf16.mxu1 %v919_v47 }
  0x68   :  { %453 = vmatpush1.bf16.msra.mxu1 %v921_v48 }
 0x103   :  { %v155_v4 = vpop.f32.mrb[0].mxu0 }
 0x104   :  { %v156_v5 = vadd.f32 %v155_v4, %v81_v2  ;;  %v157_v6 = vpop.f32.mrb[1].mxu0  ;;  %v937_v4 = vld [vmem:[#allocation6 + $0x38] sm:$0xff]  }
 0x105   :  { %v158_v7 = vadd.f32 %v157_v6, %v85_v3  ;;  %v159_v8 = vpop.f32.mrb[2].mxu0  ;;  %835 = vmatpush3.bf16.msra.mxu0 %v937_v4 }
 0x106   :  { %v160_v9 = vadd.f32 %v159_v8, %v81_v2  ;;  %v161_v10 = vpop.f32.mrb[3].mxu0  ;;  %v194_v12 = vmax.f32 %v156_v5, 0.0 }
 0x107   :  { %v162_v11 = vadd.f32 %v161_v10, %v85_v3  ;;  %v195_v14 = vmax.f32 %v158_v7, 0.0 }
 0x108   :  { %v196_v13 = vmax.f32 %v160_v9, 0.0 }
 0x109   :  { %v197_v15 = vmax.f32 %v162_v11, 0.0 }
 0x10a   :  { %v210_v16 = vpack.c.bf16 %v196_v13, %v194_v12 }
 0x10b   :  { %v165_v17 = vpop.f32.mrb[4].mxu0  ;;  %v211_v18 = vpack.c.bf16 %v197_v15, %v195_v14 }
 0x10c   :  { %v166_v19 = vadd.f32 %v165_v17, %v81_v2  ;;  %v167_v20 = vpop.f32.mrb[5].mxu0 }
 0x10d   :  { %v168_v21 = vadd.f32 %v167_v20, %v85_v3  ;;  %v169_v22 = vpop.f32.mrb[6].mxu0  ;;  %454 = vmatprep.mubr.bf16.mxu1 %v211_v18 }
 0x10e   :  { %v170_v23 = vadd.f32 %v169_v22, %v81_v2  ;;  %v171_v24 = vpop.f32.mrb[7].mxu0  ;;  %455 = vmatmul.mubr.bf16.vlgmr.msra.gmra.mrb[0].mxu1 %v210_v16  ;;  %v198_v26 = vmax.f32 %v166_v19, 0.0 }
 0x10f   :  { %v172_v25 = vadd.f32 %v171_v24, %v85_v3  ;;  %v199_v28 = vmax.f32 %v168_v21, 0.0 }
 0x110   :  { %v200_v27 = vmax.f32 %v170_v23, 0.0 }
 0x111   :  { %v201_v29 = vmax.f32 %v172_v25, 0.0 }
 0x112   :  { %v212_v30 = vpack.c.bf16 %v200_v27, %v198_v26 }
 0x113   :  { %v213_v31 = vpack.c.bf16 %v201_v29, %v199_v28  ;;  %v175_v32 = vpop.f32.mrb[8].mxu0 }
 0x114   :  { %v176_v33 = vadd.f32 %v175_v32, %v81_v2  ;;  %v177_v34 = vpop.f32.mrb[9].mxu0 }
 0x115   :  { %v178_v35 = vadd.f32 %v177_v34, %v85_v3  ;;  %v179_v36 = vpop.f32.mrb[10].mxu0  ;;  %464 = vmatprep.mubr.bf16.mxu1 %v213_v31 }
 0x116   :  { %v180_v37 = vadd.f32 %v179_v36, %v81_v2  ;;  %v181_v38 = vpop.f32.mrb[11].mxu0  ;;  %465 = vmatmul.mubr.bf16.gmra.mrb[4].mxu1 %v212_v30  ;;  %v202_v40 = vmax.f32 %v176_v33, 0.0 }
 0x117   :  { %v182_v39 = vadd.f32 %v181_v38, %v85_v3  ;;  %v203_v42 = vmax.f32 %v178_v35, 0.0 }
 0x118   :  { %v204_v41 = vmax.f32 %v180_v37, 0.0 }
 0x119   :  { %v205_v43 = vmax.f32 %v182_v39, 0.0 }
 0x11a   :  { %v214_v44 = vpack.c.bf16 %v204_v41, %v202_v40 }
 0x11b   :  { %v215_v45 = vpack.c.bf16 %v205_v43, %v203_v42  ;;  %v185_v46 = vpop.f32.mrb[12].mxu0 }
 0x11c   :  { %v186_v47 = vadd.f32 %v185_v46, %v81_v2  ;;  %v187_v48 = vpop.f32.mrb[13].mxu0 }
 0x11d   :  { %v188_v49 = vadd.f32 %v187_v48, %v85_v3  ;;  %v189_v50 = vpop.f32.mrb[14].mxu0  ;;  %474 = vmatprep.mubr.bf16.mxu1 %v215_v45 }
 0x11e   :  { %v190_v51 = vadd.f32 %v189_v50, %v81_v2  ;;  %v191_v52 = vpop.f32.mrb[15].mxu0  ;;  %475 = vmatmul.mubr.bf16.gmra.mrb[8].mxu1 %v214_v44  ;;  %v206_v54 = vmax.f32 %v186_v47, 0.0  ;;  %v250_v2 = vld [vmem:[%s1190_s5] sm:$0x3] }
 0x11f   :  { %v192_v53 = vadd.f32 %v191_v52, %v85_v3  ;;  %v207_v56 = vmax.f32 %v188_v49, 0.0  ;;  %v255_v3 = vrot.slane %v250_v2, %v80_v63  ;;  %v259_v5 = vrot.slane %v250_v2, %v84_v1 }
 0x120   :  { %v208_v55 = vmax.f32 %v190_v51, 0.0 }
 0x121   :  { %v209_v57 = vmax.f32 %v192_v53, 0.0 }
 0x122   :  { %v216_v58 = vpack.c.bf16 %v208_v55, %v206_v54 }
 0x123   :  { %v217_v59 = vpack.c.bf16 %v209_v57, %v207_v56 }
 0x125   :  { %484 = vmatprep.mubr.bf16.mxu1 %v217_v59 }
 0x126   :  { %485 = vmatmul.mubr.bf16.gmra.mrb[12].mxu1 %v216_v58 }
 0x1e1   :  { %v456_v6 = vpop.f32.mrb[0].mxu1 }
 0x1e2   :  { %v457_v7 = vadd.f32 %v456_v6, %v255_v3  ;;  %v458_v8 = vpop.f32.mrb[1].mxu1 }
 0x1e3   :  { %v459_v9 = vadd.f32 %v458_v8, %v259_v5  ;;  %v460_v10 = vpop.f32.mrb[2].mxu1 }
 0x1e4   :  { %v461_v11 = vadd.f32 %v460_v10, %v255_v3  ;;  %v462_v12 = vpop.f32.mrb[3].mxu1  ;;  %v495_v14 = vmax.f32 %v457_v7, 0.0 }
 0x1e5   :  { %v463_v13 = vadd.f32 %v462_v12, %v259_v5  ;;  %v496_v16 = vmax.f32 %v459_v9, 0.0 }
 0x1e6   :  { %v497_v15 = vmax.f32 %v461_v11, 0.0 }
 0x1e7   :  { %v498_v17 = vmax.f32 %v463_v13, 0.0 }
 0x1e8   :  { %v511_v18 = vpack.c.bf16 %v497_v15, %v495_v14  ;;  %v728_v14 = vstv %s1185_s0  ;;  %s1033_s0 = smov [#allocation8]  }
 0x1e9   :  { %v512_v19 = vpack.c.bf16 %v498_v17, %v496_v16  ;;  %v466_v20 = vpop.f32.mrb[4].mxu1  ;;  %s750_s7 = sshll.u32 %s1033_s0, 4  ;;  %s751_s7 = int_to_ptr.vmem [resolvable:$true] %s750_s7 }
 0x1ea   :  { %v467_v21 = vadd.f32 %v466_v20, %v255_v3  ;;  %v468_v63 = vpop.f32.mrb[5].mxu1  ;;  %s998_s6 = scalar_lea.vmem %s751_s7, 1024  ;;  %p1003_p3 = scmp.lt.s32.totalorder %s751_s7, %s751_s7 }
 0x1eb   :  { %v469_v22 = vadd.f32 %v468_v63, %v259_v5  ;;  %v470_v62 = vpop.f32.mrb[6].mxu1  ;;  %686 = vmatprep.mubr.bf16.mxu0 %v512_v19  ;;  %p999_p2 = scmp.ne.s32.totalorder %s751_s7, %s998_s6  ;;  %p1004_p4 = scmp.lt.s32.totalorder %s998_s6, %s998_s6 }
 0x1ec   :  { %v471_v1 = vadd.f32 %v470_v62, %v255_v3  ;;  %v472_v23 = vpop.f32.mrb[7].mxu1  ;;  %687 = vmatmul.mubr.bf16.vlgmr.msra.gmra.mrb[16].mxu0 %v511_v18  ;;  %v499_v25 = vmax.f32 %v467_v21, 0.0 }
 0x1ed   :  { %v473_v24 = vadd.f32 %v472_v23, %v259_v5  ;;  %v500_v27 = vmax.f32 %v469_v22, 0.0  ;;  %p1005_p5 = por %p1004_p4, %p1003_p3 }
 0x1ee   :  { %v501_v26 = vmax.f32 %v471_v1, 0.0 }
 0x1ef   :  { %v502_v28 = vmax.f32 %v473_v24, 0.0  ;;  %p1006_p6 = pnand %p1005_p5, %p999_p2 }
 0x1f0   :  { %v513_v29 = vpack.c.bf16 %v501_v26, %v499_v25 }
 0x1f1   :  { %v514_v30 = vpack.c.bf16 %v502_v28, %v500_v27  ;;  %v476_v31 = vpop.f32.mrb[8].mxu1 }
 0x1f2   :  { %v477_v32 = vadd.f32 %v476_v31, %v255_v3  ;;  %v478_v33 = vpop.f32.mrb[9].mxu1 }
 0x1f3   :  { %v479_v34 = vadd.f32 %v478_v33, %v259_v5  ;;  %v480_v35 = vpop.f32.mrb[10].mxu1  ;;  %694 = vmatprep.mubr.bf16.mxu0 %v514_v30 }
 0x1f4   :  { %v481_v36 = vadd.f32 %v480_v35, %v255_v3  ;;  %v482_v37 = vpop.f32.mrb[11].mxu1  ;;  %695 = vmatmul.mubr.bf16.gmra.mrb[20].mxu0 %v513_v29  ;;  %v503_v39 = vmax.f32 %v477_v32, 0.0 }
 0x1f5   :  { %v483_v38 = vadd.f32 %v482_v37, %v259_v5  ;;  %v504_v41 = vmax.f32 %v479_v34, 0.0 }
 0x1f6   :  { %v505_v40 = vmax.f32 %v481_v36, 0.0 }
 0x1f7   :  { %v506_v42 = vmax.f32 %v483_v38, 0.0 }
 0x1f8   :  { %v515_v43 = vpack.c.bf16 %v505_v40, %v503_v39 }
 0x1f9   :  { %v516_v44 = vpack.c.bf16 %v506_v42, %v504_v41  ;;  %v486_v45 = vpop.f32.mrb[12].mxu1 }
 0x1fa   :  { %v487_v46 = vadd.f32 %v486_v45, %v255_v3  ;;  %v488_v47 = vpop.f32.mrb[13].mxu1 }
 0x1fb   :  { %v489_v48 = vadd.f32 %v488_v47, %v259_v5  ;;  %v490_v49 = vpop.f32.mrb[14].mxu1  ;;  %702 = vmatprep.mubr.bf16.mxu0 %v516_v44 }
 0x1fc   :  { %v491_v50 = vadd.f32 %v490_v49, %v255_v3  ;;  %v492_v51 = vpop.f32.mrb[15].mxu1  ;;  %703 = vmatmul.mubr.bf16.gmra.mrb[24].mxu0 %v515_v43  ;;  %v507_v53 = vmax.f32 %v487_v46, 0.0 }
 0x1fd   :  { %v493_v52 = vadd.f32 %v492_v51, %v259_v5  ;;  %v508_v55 = vmax.f32 %v489_v48, 0.0 }
 0x1fe   :  { %v509_v54 = vmax.f32 %v491_v50, 0.0 }
 0x1ff   :  { %v510_v56 = vmax.f32 %v493_v52, 0.0 }
 0x200   :  { %v517_v57 = vpack.c.bf16 %v509_v54, %v507_v53 }
 0x201   :  { %v518_v58 = vpack.c.bf16 %v510_v56, %v508_v55 }
 0x203   :  { %710 = vmatprep.mubr.bf16.mxu0 %v518_v58 }
 0x204   :  { %711 = vmatmul.mubr.bf16.gmra.mrb[28].mxu0 %v517_v57 }
 0x2bf   :  { %v836_v59 = vpop.f32.mrb[16].mxu0 }
 0x2c0   :  { %v837_v61 = vpop.f32.mrb[17].mxu0 }
 0x2c1   :  { %v838_v0 = vadd.f32 %v837_v61, %v836_v59  ;;  %v839_v4 = vpop.f32.mrb[18].mxu0 }
 0x2c2   :  { %v840_v2 = vpop.f32.mrb[19].mxu0 }
 0x2c3   :  { %v689_v3 = vadd.f32 %v838_v0, %v803_v60  ;;  %v841_v6 = vadd.f32 %v840_v2, %v839_v4 }
 0x2c5   :  { %938 = vtanh.f32 %v689_v3  ;;  %v692_v5 = vadd.f32 %v841_v6, %v803_v60 }
 0x2c7   :  { %940 = vtanh.f32 %v692_v5  ;;  %v842_v7 = vpop.f32.mrb[20].mxu0 }
 0x2c8   :  { %v843_v8 = vpop.f32.mrb[21].mxu0 }
 0x2c9   :  { %v844_v9 = vadd.f32 %v843_v8, %v842_v7  ;;  %v845_v10 = vpop.f32.mrb[22].mxu0 }
 0x2ca   :  { %v846_v11 = vpop.f32.mrb[23].mxu0 }
 0x2cb   :  { %v697_v12 = vadd.f32 %v844_v9, %v803_v60  ;;  %v847_v13 = vadd.f32 %v846_v11, %v845_v10 }
 0x2cd   :  { %942 = vtanh.f32 %v697_v12  ;;  %v700_v15 = vadd.f32 %v847_v13, %v803_v60 }
 0x2cf   :  { %v939_v16 = vpop.eup %938  ;;  %944 = vtanh.f32 %v700_v15  ;;  %v848_v17 = vpop.f32.mrb[24].mxu0 }
 0x2d0   :  { %v729_v18 = vmul.f32 %v939_v16, %v728_v14  ;;  %v849_v19 = vpop.f32.mrb[25].mxu0 }
 0x2d1   :  { %v941_v20 = vpop.eup %940  ;;  %v850_v21 = vadd.f32 %v849_v19, %v848_v17  ;;  %v851_v63 = vpop.f32.mrb[26].mxu0 }
 0x2d2   :  { %737 = vst [vmem:[#allocation8] sm:$0xff] %v729_v18  ;;  %v730_v22 = vmul.f32 %v941_v20, %v728_v14  ;;  %v852_v62 = vpop.f32.mrb[27].mxu0 }
 0x2d3   :  { %v705_v1 = vadd.f32 %v850_v21, %v803_v60  ;;  %v853_v23 = vadd.f32 %v852_v62, %v851_v63 }
 0x2d4   :  { %738 = vst [vmem:[#allocation8 + $0x8] sm:$0xff] %v730_v22 }
 0x2d5   :  { %946 = vtanh.f32 %v705_v1  ;;  %v708_v24 = vadd.f32 %v853_v23, %v803_v60 }
 0x2d7   :  { %v943_v25 = vpop.eup %942  ;;  %948 = vtanh.f32 %v708_v24  ;;  %v854_v26 = vpop.f32.mrb[28].mxu0 }
 0x2d8   :  { %v731_v27 = vmul.f32 %v943_v25, %v728_v14  ;;  %v855_v28 = vpop.f32.mrb[29].mxu0 }
 0x2d9   :  { %v945_v29 = vpop.eup %944  ;;  %v856_v30 = vadd.f32 %v855_v28, %v854_v26  ;;  %v857_v31 = vpop.f32.mrb[30].mxu0 }
 0x2da   :  { %739 = vst [vmem:[#allocation8 + $0x10] sm:$0xff] %v731_v27  ;;  %v732_v32 = vmul.f32 %v945_v29, %v728_v14  ;;  %v858_v33 = vpop.f32.mrb[31].mxu0 }
 0x2db   :  { %v713_v34 = vadd.f32 %v856_v30, %v803_v60  ;;  %v859_v35 = vadd.f32 %v858_v33, %v857_v31 }
 0x2dc   :  { %740 = vst [vmem:[#allocation8 + $0x18] sm:$0xff] %v732_v32 }
 0x2dd   :  { %950 = vtanh.f32 %v713_v34  ;;  %v716_v36 = vadd.f32 %v859_v35, %v803_v60 }
 0x2df   :  { %v947_v37 = vpop.eup %946  ;;  %952 = vtanh.f32 %v716_v36 }
 0x2e0   :  { %v733_v38 = vmul.f32 %v947_v37, %v728_v14 }
 0x2e1   :  { %v949_v39 = vpop.eup %948 }
 0x2e2   :  { %741 = vst [vmem:[#allocation8 + $0x20] sm:$0xff] %v733_v38  ;;  %v734_v40 = vmul.f32 %v949_v39, %v728_v14 }
 0x2e4   :  { %742 = vst [vmem:[#allocation8 + $0x28] sm:$0xff] %v734_v40 }
 0x2e7   :  { %v951_v41 = vpop.eup %950 }
 0x2e8   :  { %v735_v42 = vmul.f32 %v951_v41, %v728_v14 }
 0x2e9   :  { %v953_v43 = vpop.eup %952 }
 0x2ea   :  { %743 = vst [vmem:[#allocation8 + $0x30] sm:$0xff] %v735_v42  ;;  %v736_v44 = vmul.f32 %v953_v43, %v728_v14 }
 0x2ec   :  { %744 = vst [vmem:[#allocation8 + $0x38] sm:$0xff] %v736_v44 }
 0x2ed   :  { %1009 = shalt.err (!%p1006_p6)
}
 0x2ee   :  { %s1010_s20 = scalar_lea.hbm %s1193_s8, 1024 }
 0x2ef   :  { %p1011_p7 = scmp.ne.s32.totalorder %s1193_s8, %s1010_s20  ;;  %p1014_p8 = scmp.lt.u32.totalorder %s1010_s20, %s1193_s8 }
 0x2f1   :  { %p1016_p9 = pnand %p1014_p8, %p1011_p7 }
 0x2f3   :  { %1019 = shalt.err (!%p1016_p9)
}
 0x2f4   :  { %756 = dma.vmem_to_hbm [thread:$0]  %s751_s7, 1024, %s1193_s8, [#allocation5], %s1027_s15, %s1027_s15, %s1028_s16  }
 0x2f5   :  { %1024 = dma.done.wait [#allocation5], 1024  }
 0x2f6   :  { %1025 = vsyncadd [#allocation5], 4294966272 }
 0x2f7   :  { %760 = vsyncpa [#allocation4], 1 }
 0x2f8   :  { %761 = vsyncpa [#allocation7], 1 }
 0x2f9   :  { %762 = vsyncpa [#allocation5], 1 }

</bundles_post_ra>
